<compile_context>
chip_gen: v7x
topology: tpu7x:2x2x1
jax: 0.10.0
libtpu: 0.0.40
codegen_flags: <defaults>
</compile_context>

<pallas_src>
import math
import numpy as np
import jax
import jax.numpy as jnp
from jax import lax
from jax.experimental import pallas as pl
from jax.experimental.pallas import tpu as pltpu


# ----------------------------------------------------------------------------- kernels

def bigru_kernel(xw_ref, whh_ref, bhh_ref, out_ref):
    # One direction of the encoder; full time loop inside the kernel.
    # xw_ref: (T, B, 3H) = x @ W_ih + b_ih (hoisted);  whh: (H, 3H);  bhh: (1, 3H)
    T, B, H3 = xw_ref.shape
    H = H3 // 3
    whh = whh_ref[...]
    bhh = bhh_ref[...]

    def step(t, h):
        xw = xw_ref[pl.ds(t, 1), :, :][0]                               # (B, 3H)
        hw = jnp.dot(h, whh, preferred_element_type=jnp.float32) + bhh  # (B, 3H)
        r = jax.nn.sigmoid(xw[:, :H] + hw[:, :H])
        z = jax.nn.sigmoid(xw[:, H:2 * H] + hw[:, H:2 * H])
        n = jnp.tanh(xw[:, 2 * H:] + r * hw[:, 2 * H:])
        h_new = (1.0 - z) * n + z * h
        out_ref[pl.ds(t, 1), :, :] = h_new[None]
        return h_new

    lax.fori_loop(0, T, step, jnp.zeros((B, H), jnp.float32))


def attention_kernel(x_ref, o_ref):
    # scores = X X^T ; softmax ; out = P X   (norm=None; p_attn not materialized)
    x = x_ref[...]                                                        # (T, 2H)
    s = jnp.einsum('td,sd->ts', x, x, preferred_element_type=jnp.float32)
    e = jnp.exp(s - jnp.max(s, axis=-1, keepdims=True))
    p = e / jnp.sum(e, axis=-1, keepdims=True)
    o_ref[...] = jnp.einsum('ts,sd->td', p, x, preferred_element_type=jnp.float32)


def mlp3_kernel(x_ref, w1, b1, w2, b2, w3, b3, out_ref):
    # nn.Sequential(ReLU, Linear, ReLU, Linear, ReLU, Linear)
    x = jnp.maximum(x_ref[...], 0.0)
    h1 = jnp.maximum(jnp.dot(x, w1[...], preferred_element_type=jnp.float32) + b1[...], 0.0)
    h2 = jnp.maximum(jnp.dot(h1, w2[...], preferred_element_type=jnp.float32) + b2[...], 0.0)
    out_ref[...] = jnp.dot(h2, w3[...], preferred_element_type=jnp.float32) + b3[...]


def decoder_kernel(lens_ref, xw_ref, blend1t_ref, hinit_ref,
                   whh_ref, bhh_ref, w2t_ref, vt_row_ref,
                   scores_ref, idx_ref):
    # Whole pointer-network decode loop for one sentence.
    #   xw_ref:     (T, 3Hd)  = context_ @ W_ih + b_ih   (hoisted input projection)
    #   blend1t_ref:(Hd, T)   = (U @ W1)^T               (hoisted, transposed)
    #   scores_ref: (T, T)    row i = scores of the decode step that started at i
    #   idx_ref:    (T, 1)    absolute argmax position chosen at that step
    b = pl.program_id(0)
    L = lens_ref[b]
    T = xw_ref.shape[0]
    Hd = hinit_ref.shape[1]                               # decoder hidden = 2H

    blend1t = blend1t_ref[...]                            # (Hd, T)
    whh = whh_ref[...]                                    # (Hd, 3Hd)
    bhh = bhh_ref[...]                                    # (1, 3Hd)
    w2t = w2t_ref[...]                                    # (Hd, Hd)
    vt_row = vt_row_ref[...]                              # (1, Hd)
    h0 = hinit_ref[...]                                   # (1, Hd)

    lane_pos = lax.broadcasted_iota(jnp.int32, (1, T), 1)
    lane_pos_f = lane_pos.astype(jnp.float32)
    # (Hd, Hd) identity mask, hoisted: used to move blend2 from lane- to sublane-layout
    eye = (lax.broadcasted_iota(jnp.int32, (Hd, Hd), 0)
           == lax.broadcasted_iota(jnp.int32, (Hd, Hd), 1)).astype(jnp.float32)

    scores_ref[...] = jnp.zeros_like(scores_ref)
    idx_ref[...] = jnp.zeros_like(idx_ref)

    def step(_, carry):
        i, h = carry
        active = i < (L - 1)
        i_c = jnp.minimum(i, T - 1)                       # keep loads/stores in bounds

        # fused GRUCell (input projection already hoisted)
        xw = xw_ref[pl.ds(i_c, 1), :]                                     # (1, 3Hd)
        hw = jnp.dot(h, whh, preferred_element_type=jnp.float32) + bhh    # (1, 3Hd)
        r = jax.nn.sigmoid(xw[:, :Hd] + hw[:, :Hd])
        z = jax.nn.sigmoid(xw[:, Hd:2 * Hd] + hw[:, Hd:2 * Hd])
        n = jnp.tanh(xw[:, 2 * Hd:] + r * hw[:, 2 * Hd:])
        h_new = (1.0 - z) * n + z * h                                     # (1, Hd)

        # pointer scores, produced directly in lane-dense (1, T) layout
        blend2 = jnp.dot(h_new, w2t, preferred_element_type=jnp.float32)  # (1, Hd)
        blend2_col = jnp.sum(eye * blend2, axis=1, keepdims=True)         # (Hd, 1)
        s_row = jnp.dot(vt_row, jnp.tanh(blend1t + blend2_col),
                        preferred_element_type=jnp.float32)               # (1, T)

        # first-index-of-max over the valid range [i, L)
        valid = jnp.logical_and(lane_pos >= i_c, lane_pos < L)
        masked = jnp.where(valid, s_row, -jnp.inf)
        m = jnp.max(masked)
        idx = jnp.min(jnp.where(masked == m, lane_pos_f,
                                jnp.float32(T))).astype(jnp.int32)
        rel = idx - i_c

        take = jnp.logical_and(rel != (L - 1 - i_c), rel != 0)            # mode == 'test'
        i_next = jnp.where(take, i_c + rel + 1, i_c + 1)
        i_next = jnp.where(active, i_next, i)
        h_out = jnp.where(active, h_new, h)

        # Unconditional stores: once inactive, i_c >= L-1, a row the host never reads.
        scores_ref[pl.ds(i_c, 1), :] = s_row
        idx_ref[pl.ds(i_c, 1), :] = jnp.full((1, 1), idx, jnp.int32)
        return (i_next, h_out)

    lax.fori_loop(0, T - 1, step, (jnp.zeros((), jnp.int32), h0))


def region_kernel(bi_ref, si_ref, ei_ref, unp_ref, w1, b1, w2, b2, w3, b3, out_ref):
    # CatRepr([h_s, h_e, mean(h_s:e)]) + RegionCLF.fc, one fragment per grid step.
    r = pl.program_id(0)
    s = si_ref[r]
    e = ei_ref[r]
    h = unp_ref[...]                                      # (T, 2H)
    T = h.shape[0]

    h_s = unp_ref[pl.ds(s, 1), :]                         # (1, 2H) dynamic sublane load
    h_e = unp_ref[pl.ds(e, 1), :]
    pos = lax.broadcasted_iota(jnp.int32, (T, 1), 0)
    in_rng = jnp.logical_and(pos >= s, pos <= e).astype(jnp.float32)
    cnt = (e - s + 1).astype(jnp.float32)
    h_m = jnp.sum(in_rng * h, axis=0, keepdims=True) / cnt

    x = jnp.maximum(jnp.concatenate([h_s, h_e, h_m], axis=-1), 0.0)       # (1, 6H)
    h1 = jnp.maximum(jnp.dot(x, w1[...], preferred_element_type=jnp.float32) + b1[...], 0.0)
    h2 = jnp.maximum(jnp.dot(h1, w2[...], preferred_element_type=jnp.float32) + b2[...], 0.0)
    out_ref[...] = jnp.dot(h2, w3[...], preferred_element_type=jnp.float32) + b3[...]


# ----------------------------------------------------------------------------- wrappers

def _replicated_spec(shape):
    nd = len(shape)
    return pl.BlockSpec(shape, lambda *_: (0,) * nd)


def bigru(xw_both, whh_both, bhh_both):
    """xw_both: (2, T, B, 3H)  whh_both: (2, H, 3H)  bhh_both: (2, 1, 3H) -> (2, T, B, H)."""
    _, T, B, H3 = xw_both.shape
    H = H3 // 3
    grid_spec = pltpu.PrefetchScalarGridSpec(
        num_scalar_prefetch=0,
        grid=(2,),
        in_specs=[pl.BlockSpec((None, T, B, H3), lambda d: (d, 0, 0, 0)),
                  pl.BlockSpec((None, H, H3), lambda d: (d, 0, 0)),
                  pl.BlockSpec((None, 1, H3), lambda d: (d, 0, 0))],
        out_specs=pl.BlockSpec((None, T, B, H), lambda d: (d, 0, 0, 0)),
    )
    return pl.pallas_call(
        bigru_kernel,
        out_shape=jax.ShapeDtypeStruct((2, T, B, H), jnp.float32),
        grid_spec=grid_spec,
        compiler_params=pltpu.CompilerParams(dimension_semantics=("parallel",)),
    )(xw_both, whh_both, bhh_both)


def attention(x):
    """x: (B, T, 2H) -> (B, T, 2H), gridded over batch."""
    B, T, H2 = x.shape
    grid_spec = pltpu.PrefetchScalarGridSpec(
        num_scalar_prefetch=0,
        grid=(B,),
        in_specs=[pl.BlockSpec((None, T, H2), lambda b: (b, 0, 0))],
        out_specs=pl.BlockSpec((None, T, H2), lambda b: (b, 0, 0)),
    )
    return pl.pallas_call(
        attention_kernel,
        out_shape=jax.ShapeDtypeStruct((B, T, H2), jnp.float32),
        grid_spec=grid_spec,
        compiler_params=pltpu.CompilerParams(dimension_semantics=("parallel",)),
    )(x)


def mlp3(x, p):
    """x: (N, Din) -> (N, Dout).  TODO(synk): tile over N for realistic T*B."""
    N = x.shape[0]
    Dout = p['w3'].shape[1]
    return pl.pallas_call(
        mlp3_kernel,
        out_shape=jax.ShapeDtypeStruct((N, Dout), jnp.float32),
    )(x, p['w1'], p['b1'], p['w2'], p['b2'], p['w3'], p['b3'])


def pointer_decode(lens_arr, xw_dec, blend1_t, h_init, dec_p, ptr_p):
    """Full on-device pointer decode -> ((B,T,T) score rows, (B,T,1) argmax trace)."""
    B, T, H3d = xw_dec.shape
    H2 = blend1_t.shape[1]
    grid_spec = pltpu.PrefetchScalarGridSpec(
        num_scalar_prefetch=1,
        grid=(B,),
        in_specs=[pl.BlockSpec((None, T, H3d), lambda b, lens: (b, 0, 0)),
                  pl.BlockSpec((None, H2, T), lambda b, lens: (b, 0, 0)),
                  pl.BlockSpec((None, 1, H2), lambda b, lens: (b, 0, 0)),
                  _replicated_spec(dec_p['whh'].shape),
                  _replicated_spec(dec_p['bhh'].shape),
                  _replicated_spec(ptr_p['w2t'].shape),
                  _replicated_spec(ptr_p['vt_row'].shape)],
        out_specs=[pl.BlockSpec((None, T, T), lambda b, lens: (b, 0, 0)),
                   pl.BlockSpec((None, T, 1), lambda b, lens: (b, 0, 0))],
    )
    return pl.pallas_call(
        decoder_kernel,
        out_shape=(jax.ShapeDtypeStruct((B, T, T), jnp.float32),
                   jax.ShapeDtypeStruct((B, T, 1), jnp.int32)),
        grid_spec=grid_spec,
        compiler_params=pltpu.CompilerParams(dimension_semantics=("parallel",)),
    )(lens_arr, xw_dec, blend1_t, h_init,
      dec_p['whh'], dec_p['bhh'], ptr_p['w2t'], ptr_p['vt_row'])


def region_classify(unpacked, b_idx, starts, ends, p):
    """unpacked: (B, T, 2H); fragment (batch,start,end) via scalar prefetch -> (R, 2)."""
    R = b_idx.shape[0]
    B, T, H2 = unpacked.shape
    grid_spec = pltpu.PrefetchScalarGridSpec(
        num_scalar_prefetch=3,
        grid=(R,),
        in_specs=[pl.BlockSpec((None, T, H2), lambda r, bi, si, ei: (bi[r], 0, 0)),
                  _replicated_spec(p['w1'].shape),
                  _replicated_spec(p['b1'].shape),
                  _replicated_spec(p['w2'].shape),
                  _replicated_spec(p['b2'].shape),
                  _replicated_spec(p['w3'].shape),
                  _replicated_spec(p['b3'].shape)],
        out_specs=pl.BlockSpec((None, 1, 2), lambda r, bi, si, ei: (r, 0, 0)),
    )
    out = pl.pallas_call(
        region_kernel,
        out_shape=jax.ShapeDtypeStruct((R, 1, 2), jnp.float32),
        grid_spec=grid_spec,
        compiler_params=pltpu.CompilerParams(dimension_semantics=("arbitrary",)),
    )(b_idx, starts, ends, unpacked,
      p['w1'], p['b1'], p['w2'], p['b2'], p['w3'], p['b3'])
    return out.reshape(R, 2)


# ----------------------------------------------------------------------------- params

def _uniform(key, shape, bound):
    return jax.random.uniform(key, shape, jnp.float32, -bound, bound)


def make_gru_params(key, in_dim, hid):
    # fused gate layout: W_ih (D, 3H), W_hh (H, 3H), biases (1, 3H); gate order [r, z, n]
    ks = jax.random.split(key, 4)
    bd = 1.0 / math.sqrt(hid)
    return {'wih': _uniform(ks[0], (in_dim, 3 * hid), bd),
            'whh': _uniform(ks[1], (hid, 3 * hid), bd),
            'bih': _uniform(ks[2], (1, 3 * hid), bd),
            'bhh': _uniform(ks[3], (1, 3 * hid), bd)}


def make_mlp_params(key, dims):
    # dims = [d_in, d_h1, d_h2, d_out]; weights stored transposed (in, out)
    ks = jax.random.split(key, 6)
    p = {}
    for i in range(3):
        bd = 1.0 / math.sqrt(dims[i])
        p[f'w{i+1}'] = _uniform(ks[2 * i], (dims[i], dims[i + 1]), bd)
        p[f'b{i+1}'] = _uniform(ks[2 * i + 1], (1, dims[i + 1]), bd)
    return p


def make_params(key, n_pos, n_dir, emb_dim, hidden_size):
    D = 3 * emb_dim
    H = hidden_size
    H2 = 2 * H
    ks = jax.random.split(key, 12)
    emb_pos = jax.random.normal(ks[0], (n_pos, emb_dim), jnp.float32).at[0].set(0.0)
    emb_dir = jax.random.normal(ks[1], (n_dir, emb_dim), jnp.float32).at[0].set(0.0)
    emb_fe = jax.random.normal(ks[2], (2, emb_dim), jnp.float32).at[0].set(0.0)
    bd = 1.0 / math.sqrt(H2)
    return {
        'emb_pos': emb_pos, 'emb_dir': emb_dir, 'emb_fe': emb_fe,
        'enc_fwd': make_gru_params(ks[3], D, H),
        'enc_bwd': make_gru_params(ks[4], D, H),
        'dec': make_gru_params(ks[5], D + H2, H2),
        'ptr': {'w1t': _uniform(ks[6], (H2, H2), bd),
                'w2t': _uniform(ks[7], (H2, H2), bd),
                'vt_row': _uniform(ks[8], (1, H2), bd)},
        'ht_labeler': make_mlp_params(ks[9], [H2, H, 64, 2]),
        'region_clf': make_mlp_params(ks[10], [H2 * 3, H2, 64, 2]),
    }


# ----------------------------------------------------------------------------- forward

def end2end_forward(params, sentences, sentence_lengths, dirt, fe, hidden_size):
    """Mirrors End2EndModel.forward with mode='test' (eval: dropout = identity)."""
    B, T = sentences.shape
    H = hidden_size
    H2 = 2 * H
    lens_arr = jnp.asarray(sentence_lengths, dtype=jnp.int32)

    # --- embeddings + concat (glue) ---
    max_value = int(max(sentence_lengths))
    word_repr = jnp.concatenate(
        [params['emb_pos'][sentences],
         params['emb_dir'][dirt[:, :max_value]],
         params['emb_fe'][fe[:, :max_value]]], axis=-1)            # (B, T, D)

    # --- BiGRU encoder: hoisted input projections + folded-time recurrence kernel ---
    x_tm = jnp.transpose(word_repr, (1, 0, 2))                     # (T, B, D)
    pf, pb = params['enc_fwd'], params['enc_bwd']
    xw_fwd = jnp.einsum('tbd,dh->tbh', x_tm, pf['wih']) + pf['bih'][0]
    xw_bwd = jnp.einsum('tbd,dh->tbh', x_tm[::-1], pb['wih']) + pb['bih'][0]
    xw_both = jnp.stack([xw_fwd, xw_bwd], axis=0)                  # (2, T, B, 3H)
    whh_both = jnp.stack([pf['whh'], pb['whh']], axis=0)
    bhh_both = jnp.stack([pf['bhh'], pb['bhh']], axis=0)
    h_both = bigru(xw_both, whh_both, bhh_both)                    # (2, T, B, H)
    unpacked = jnp.transpose(
        jnp.concatenate([h_both[0], h_both[1][::-1]], axis=-1), (1, 0, 2))   # (B, T, 2H)

    # forward() runs self.enc twice on the same word_repr; in eval (dropout=id) the
    # second pass equals the first, so reuse `unpacked` as the attention input.
    unpacked_bound = attention(unpacked)                           # (B, T, 2H)

    # --- ht_labeler over every token ---
    sent_first = jnp.transpose(unpacked_bound, (1, 0, 2)).reshape(T * B, H2)
    ht = mlp3(sent_first, params['ht_labeler'])                    # (T*B, 2)
    sentence_outputs = jnp.transpose(ht.reshape(T, B, 2), (1, 2, 0))   # (B, 2, T)

    # --- pointer decoder: hoist input projection + blend1 (transposed), one kernel ---
    context_ = jnp.concatenate([word_repr, unpacked_bound], -1)    # (B, T, D+2H)
    dec_p = params['dec']
    xw_dec = jnp.einsum('btd,dh->bth', context_, dec_p['wih']) + dec_p['bih'][0]   # (B,T,3Hd)
    blend1_t = jnp.einsum('btd,dk->bkt', unpacked, params['ptr']['w1t'])           # (B,H2,T)
    h_init = unpacked[jnp.arange(B), lens_arr - 1][:, None, :]                     # (B,1,H2)

    scores, idx_trace = pointer_decode(lens_arr, xw_dec, blend1_t, h_init,
                                       dec_p, params['ptr'])       # (B,T,T), (B,T,1)
    scores_np = np.asarray(jax.device_get(scores))                 # single big D2H
    idx_np = np.asarray(jax.device_get(idx_trace))

    # Host replay uses the device-computed argmax trace -> no re-argmax, no extra syncs.
    probs_, frag_all = [], []
    for k in range(B):
        L = int(sentence_lengths[k])
        i = 0
        probs, frag = [], []
        while i < L - 1:
            probs.append(scores_np[k, i, i:L].copy())              # numpy, same as vt scores
            index = int(idx_np[k, i, 0]) - i                       # relative argmax
            if index != (L - 1 - i) and index != 0:                # mode == 'test'
                frag.append((i, i + index))
                i = i + index + 1
            else:
                i = i + 1
        probs_.append(probs)
        frag_all.append(frag)

    # --- region classifier: fused CatRepr + MLP kernel over fragments ---
    b_idx, starts, ends = [], [], []
    for k in range(B):                                             # batch-sorted
        for (s, e) in frag_all[k]:
            b_idx.append(k)
            starts.append(s)
            ends.append(e)

    region_labels_expand = []                                      # empty on the 'test' path
    R_real = len(b_idx)
    region_flag = R_real != 0
    region_outputs = None
    if region_flag:
        R_pad = max(8, -(-R_real // 8) * 8)                        # bucket to multiple of 8
        pad = R_pad - R_real
        b_idx += [0] * pad
        starts += [0] * pad
        ends += [0] * pad
        out = region_classify(unpacked,
                              jnp.asarray(b_idx, jnp.int32),
                              jnp.asarray(starts, jnp.int32),
                              jnp.asarray(ends, jnp.int32),
                              params['region_clf'])                # (R_pad, 2)
        region_outputs = out[:R_real]

    return probs_, frag_all, region_outputs, region_labels_expand, region_flag, sentence_outputs


# ----------------------------------------------------------------------------- main

if __name__ == "__main__":
    B, T = 2, 8
    emb_dim = 8
    hidden_size = 10
    n_pos, n_dir = 20, 6

    key = jax.random.PRNGKey(0)
    k_param, k_sent, k_dir, k_fe = jax.random.split(key, 4)

    params = make_params(k_param, n_pos, n_dir, emb_dim, hidden_size)

    sentences = jax.random.randint(k_sent, (B, T), 1, n_pos, dtype=jnp.int32)
    dirt = jax.random.randint(k_dir, (B, T), 1, n_dir, dtype=jnp.int32)
    fe = jax.random.randint(k_fe, (B, T), 0, 2, dtype=jnp.int32)
    sentence_lengths = [T, T]   # full-length sequences (packed-seq masking not replicated)

    outs = end2end_forward(params, sentences, sentence_lengths, dirt, fe, hidden_size)
    probs_, frag_all, region_outputs, region_labels_expand, region_flag, sentence_outputs = outs

    jax.block_until_ready(sentence_outputs)
    if region_flag:
        jax.block_until_ready(region_outputs)

    print("KERNEL_OK")
</pallas_src>

<mosaic_0001>
module attributes {stable_mosaic.version = 11 : i64} {
  func.func @bigru_kernel(%arg0: i32, %arg1: memref<1x8x2x30xf32, #tpu.memory_space<vmem>>, %arg2: memref<1x10x30xf32, #tpu.memory_space<vmem>>, %arg3: memref<1x1x30xf32, #tpu.memory_space<vmem>>, %arg4: memref<1x8x2x10xf32, #tpu.memory_space<vmem>>) attributes {dimension_semantics = [#tpu.dimension_semantics<parallel>], iteration_bounds = array<i64: 2>, scalar_prefetch = 0 : i64, scratch_operands = 0 : i64, tpu.core_type = #tpu.core_type<tc>, window_params = [{transform_indices = @transform_0, window_bounds = array<i64: 1, 8, 2, 30>}, {transform_indices = @transform_1, window_bounds = array<i64: 1, 10, 30>}, {transform_indices = @transform_2, window_bounds = array<i64: 1, 1, 30>}, {transform_indices = @transform_3, window_bounds = array<i64: 1, 8, 2, 10>}]} {
    %c0 = arith.constant 0 : index
    %c0_0 = arith.constant 0 : index
    %c0_1 = arith.constant 0 : index
    %0 = vector.load %arg2[%c0, %c0_0, %c0_1] : memref<1x10x30xf32, #tpu.memory_space<vmem>>, vector<1x10x30xf32>
    %1 = vector.shape_cast %0 : vector<1x10x30xf32> to vector<10x30xf32>
    %c0_2 = arith.constant 0 : index
    %c0_3 = arith.constant 0 : index
    %c0_4 = arith.constant 0 : index
    %2 = vector.load %arg3[%c0_2, %c0_3, %c0_4] : memref<1x1x30xf32, #tpu.memory_space<vmem>>, vector<1x1x30xf32>
    %3 = vector.shape_cast %2 : vector<1x1x30xf32> to vector<1x30xf32>
    %cst = arith.constant 0.000000e+00 : f32
    %4 = vector.broadcast %cst : f32 to vector<2x10xf32>
    %c0_i32 = arith.constant 0 : i32
    %c8_i32 = arith.constant 8 : i32
    %5 = arith.addi %c0_i32, %c8_i32 : i32
    %c1_i32 = arith.constant 1 : i32
    %6 = scf.for %arg5 = %c0_i32 to %5 step %c1_i32 iter_args(%arg6 = %4) -> (vector<2x10xf32>)  : i32 {
      %c0_6 = arith.constant 0 : index
      %7 = arith.index_cast %arg5 : i32 to index
      %c0_7 = arith.constant 0 : index
      %c0_8 = arith.constant 0 : index
      %8 = vector.load %arg1[%c0_6, %7, %c0_7, %c0_8] : memref<1x8x2x30xf32, #tpu.memory_space<vmem>>, vector<1x1x2x30xf32>
      %9 = vector.shape_cast %8 : vector<1x1x2x30xf32> to vector<1x2x30xf32>
      %10 = vector.shape_cast %9 : vector<1x2x30xf32> to vector<2x30xf32>
      %cst_9 = arith.constant dense<0.000000e+00> : vector<2x30xf32>
      %11 = tpu.matmul %arg6, %1, %cst_9 {dimension_numbers = #tpu.dot_dimension_numbers<[1], [0], [0], [1], [0, 0, 1, 1], [], []>} : vector<2x10xf32>, vector<10x30xf32>, vector<2x30xf32> -> vector<2x30xf32>
      %12 = vector.broadcast %3 : vector<1x30xf32> to vector<2x30xf32>
      %13 = arith.addf %11, %12 : vector<2x30xf32>
      %14 = vector.extract_strided_slice %10 {offsets = [0, 0], sizes = [2, 10], strides = [1, 1]} : vector<2x30xf32> to vector<2x10xf32>
      %15 = vector.extract_strided_slice %13 {offsets = [0, 0], sizes = [2, 10], strides = [1, 1]} : vector<2x30xf32> to vector<2x10xf32>
      %16 = arith.addf %14, %15 : vector<2x10xf32>
      %17 = arith.negf %16 : vector<2x10xf32>
      %18 = math.exp %17 : vector<2x10xf32>
      %cst_10 = arith.constant 1.000000e+00 : f32
      %19 = vector.broadcast %cst_10 : f32 to vector<2x10xf32>
      %20 = arith.addf %19, %18 : vector<2x10xf32>
      %21 = arith.divf %19, %20 : vector<2x10xf32>
      %22 = vector.extract_strided_slice %10 {offsets = [0, 10], sizes = [2, 10], strides = [1, 1]} : vector<2x30xf32> to vector<2x10xf32>
      %23 = vector.extract_strided_slice %13 {offsets = [0, 10], sizes = [2, 10], strides = [1, 1]} : vector<2x30xf32> to vector<2x10xf32>
      %24 = arith.addf %22, %23 : vector<2x10xf32>
      %25 = arith.negf %24 : vector<2x10xf32>
      %26 = math.exp %25 : vector<2x10xf32>
      %cst_11 = arith.constant 1.000000e+00 : f32
      %27 = vector.broadcast %cst_11 : f32 to vector<2x10xf32>
      %28 = arith.addf %27, %26 : vector<2x10xf32>
      %29 = arith.divf %27, %28 : vector<2x10xf32>
      %30 = vector.extract_strided_slice %10 {offsets = [0, 20], sizes = [2, 10], strides = [1, 1]} : vector<2x30xf32> to vector<2x10xf32>
      %31 = vector.extract_strided_slice %13 {offsets = [0, 20], sizes = [2, 10], strides = [1, 1]} : vector<2x30xf32> to vector<2x10xf32>
      %32 = arith.mulf %21, %31 : vector<2x10xf32>
      %33 = arith.addf %30, %32 : vector<2x10xf32>
      %34 = math.tanh %33 : vector<2x10xf32>
      %cst_12 = arith.constant 1.000000e+00 : f32
      %35 = vector.broadcast %cst_12 : f32 to vector<2x10xf32>
      %36 = arith.subf %35, %29 : vector<2x10xf32>
      %37 = arith.mulf %36, %34 : vector<2x10xf32>
      %38 = arith.mulf %29, %arg6 : vector<2x10xf32>
      %39 = arith.addf %37, %38 : vector<2x10xf32>
      %40 = vector.shape_cast %39 : vector<2x10xf32> to vector<1x2x10xf32>
      %c0_13 = arith.constant 0 : index
      %41 = arith.index_cast %arg5 : i32 to index
      %c0_14 = arith.constant 0 : index
      %c0_15 = arith.constant 0 : index
      %42 = vector.load %arg4[%c0_13, %41, %c0_14, %c0_15] : memref<1x8x2x10xf32, #tpu.memory_space<vmem>>, vector<1x1x2x10xf32>
      %43 = vector.shape_cast %42 : vector<1x1x2x10xf32> to vector<1x2x10xf32>
      %44 = vector.shape_cast %40 : vector<1x2x10xf32> to vector<1x1x2x10xf32>
      tpu.vector_store %arg4[%c0_13, %41, %c0_14, %c0_15], %44 {strides = array<i32>} : memref<1x8x2x10xf32, #tpu.memory_space<vmem>>, vector<1x1x2x10xf32>,
      scf.yield %39 : vector<2x10xf32>
    }
    %c8_i32_5 = arith.constant 8 : i32
    return
  }
  func.func @transform_0(%arg0: i32) -> (i32, i32, i32, i32) {
    %c0_i32 = arith.constant 0 : i32
    %c0_i32_0 = arith.constant 0 : i32
    %c0_i32_1 = arith.constant 0 : i32
    %c0_i32_2 = arith.constant 0 : i32
    return %arg0, %c0_i32, %c0_i32_0, %c0_i32_1 : i32, i32, i32, i32
  }
  func.func @transform_1(%arg0: i32) -> (i32, i32, i32) {
    %c0_i32 = arith.constant 0 : i32
    %c0_i32_0 = arith.constant 0 : i32
    %c0_i32_1 = arith.constant 0 : i32
    return %arg0, %c0_i32, %c0_i32_0 : i32, i32, i32
  }
  func.func @transform_2(%arg0: i32) -> (i32, i32, i32) {
    %c0_i32 = arith.constant 0 : i32
    %c0_i32_0 = arith.constant 0 : i32
    %c0_i32_1 = arith.constant 0 : i32
    return %arg0, %c0_i32, %c0_i32_0 : i32, i32, i32
  }
  func.func @transform_3(%arg0: i32) -> (i32, i32, i32, i32) {
    %c0_i32 = arith.constant 0 : i32
    %c0_i32_0 = arith.constant 0 : i32
    %c0_i32_1 = arith.constant 0 : i32
    %c0_i32_2 = arith.constant 0 : i32
    return %arg0, %c0_i32, %c0_i32_0, %c0_i32_1 : i32, i32, i32, i32
  }
}

</mosaic_0001>

<bundles_post_ra>
// kernel: tpu_custom_call.1
= control target key start
LH: loop header
LB: loop body
LE: loop exit
PB: predicated region body
PF: predicated region fallthrough
CT: control target
= control target key end

     0   :  { %8 = vsyncpa [#allocation3], 0  ;;  %s798_s0 = inlined_call_operand.vmem [shape: f32[2,8,2,30], index: 0, kind: input, shape index: {}]   ;;  %s799_s1 = inlined_call_operand.vmem [shape: f32[2,10,30], index: 1, kind: input, shape index: {}]   ;;  %s800_s2 = inlined_call_operand.vmem [shape: f32[2,1,30], index: 2, kind: input, shape index: {}]   ;;  %s801_s3 = inlined_call_operand.hbm [shape: f32[2,8,2,10], index: 3, kind: output, shape index: {}]  }
   0x1   :  { %10 = vsyncpa [#allocation3 + $0x1], 0  ;;  %s660_s12 = smov 0   ;;  %s662_s13 = smov 0  }
   0x2   :  { %s664_s14 = smov 0   ;;  %s666_s15 = smov 0  }
   0x3 LB: > { %s681_s16 = sadd.s32 4294967295, %s620_s15   ;;  %s444_s17 = sadd.s32 4294967294, %s620_s15   ;;  %s620_s15 = sphi %s666_s15, %s807_s15   ;;  %s616_s14 = sphi %s664_s14, %s806_s14   ;;  %s612_s13 = sphi %s662_s13, %s805_s13   ;;  %s608_s12 = sphi %s660_s12, %s804_s12  }
   0x4   : > { %s685_s18 = sadd.s32 1, %s620_s15   ;;  %s101_s19 = sadd.s32 1, %s616_s14 }
   0x5   : > { %s98_s20 = ssub.s32 %s620_s15, %s685_s18  ;;  %p111_p0 = scmp.ne.s32.totalorder %s616_s14, %s612_s13 }
   0x6   : > { %p99_p1 = scmp.eq.s32.totalorder %s98_s20, 0  ;;  %p112_p2 = scmp.eq.s32.totalorder %s681_s16, 1 }
   0x7   : > { %p117_p3 = scmp.ne.s32.totalorder %s612_s13, %s608_s12  ;;  %p118_p4 = scmp.eq.s32.totalorder %s444_s17, 1 }
   0x8   : > { %s696_s21 = scalar_select %p99_p1, %s616_s14, %s101_s19  }
   0x9   : > { %p698_p5 = por %p112_p2, %p111_p0  ;;  %p702_p6 = por %p118_p4, %p117_p3 }
   0xa   : > { %p447_p7 = scmp.ge.s32.totalorder %s620_s15, 1  ;;  %p158_p8 = scmp.lt.s32.totalorder %s620_s15, 3 }
   0xc   : > { %p159_p9 = pnand %p447_p7, %p158_p8 }
   0xd   : > { %s187_s24 = sand.u32 (!%p159_p9), 1, %s612_s13   ;;  %p190_p10 = scmp.lt.s32.totalorder (!%p159_p9), %s681_s16, 1  ;;  %v622_v3 = vmov (!%p159_p9), 0.0  }
   0xe   : > { %162 = sbr.rel (%p159_p9) target bundleno = 850 (0x352), region = 32  ;;  %s712_s25 = sshll.u32 (!%p159_p9), %s187_s24, 4 }
   0xf   : > { %s189_s10 = scalar_lea.vmem (!%p159_p9), [#allocation2], %s712_s25  ;;  %s729_s11 = smov (!%p159_p9), 0  }
  0x15   : > { %s191_s26 = scalar_select %p190_p10, %s681_s16, 1 }
  0x17   : > { %s463_s27 = sshll.u32 %s191_s26, 4  ;;  %s202_s30 = scalar_lea.vmem %s800_s2, %s191_s26 }
  0x18   : > { %s721_s6 = scalar_lea.vmem %s798_s0, %s463_s27  ;;  %s199_s9 = scalar_lea.vmem %s799_s1, %s463_s27  ;;  %v726_v0 = vld [vmem:[%s202_s30] ss:$0 sm:$0xff] }
  0x19   : > { %v203_v1 = vld [vmem:[%s199_s9] sm:$0xff]  ;;  %v204_v2 = vld [vmem:[%s199_s9 + $0x8] sm:$0x3] }
  0x1a LB: >> { %vm228_vm0 = vcmask 1041408   ;;  %v477_v4 = vpack.c.bf16 %v204_v2, %v203_v1  ;;  %v630_v5 = vmov 0.0|0.0   ;;  %s631_s17 = smov 118   ;;  %vm632_vm1 = vmmov 1   ;;  %s635_s19 = smov 108   ;;  %s628_s11 = sphi %s729_s11, %s211_s11   ;;  %v624_v3 = vphi %v622_v3, %v327_v3  }
  0x1b   : >> { %476 = vmatprep.subr.bf16.mxu0 %v630_v5  ;;  %223 = vrot.lane.b32.xlu0 %v624_v3, %s631_s17  ;;  %vm478_vm2 = vmpackc.low %vm228_vm0, %vm632_vm1  ;;  %vm633_vm3 = vmmov 0   ;;  %v634_v6 = vmov 0.0   ;;  %vm225_vm4 = vcmask 80896   ;;  %s453_s20 = sshll.u32 %s628_s11, 1  ;;  %s636_s27 = smov 20   ;;  %vm333_vm5 = vcmask 74752  }
  0x1c   : >> { %473 = vmatprep.mubr.msk.f32.mxu0 %vm633_vm3, %v634_v6  ;;  %479 = vmatpush3.bf16.msk.msra.mxu0 %vm478_vm2, %v477_v4  ;;  %s214_s26 = scalar_lea.vmem %s721_s6, %s453_s20  ;;  %s332_s28 = scalar_lea.vmem %s189_s10, %s453_s20 [#allocation2] }
  0x1d   : >> { %v215_v11 = vld [vmem:[%s214_s26] sm:$0x3]  ;;  %s211_s11 = sadd.s32 1, %s628_s11  }
  0x1e   : >> { %p208_p11 = scmp.ge.s32.totalorder %s211_s11, 8  }
  0x1f   : > { %s465_s29 = sshll.u32 (%p208_p11), %s681_s16, 8  ;;  %s349_s7 = sshll.u32 (%p208_p11), %s189_s10, 4  ;;  %s753_s7 = int_to_ptr.vmem [resolvable:$true] %s349_s7 }
  0x20   : > { %s749_s5 = scalar_lea.hbm (%p208_p11), %s801_s3, %s465_s29  ;;  %s757_s8 = scalar_lea.sflag (%p208_p11), [#allocation3], %s187_s24 }
  0x21   : > { %s550_s6 = scalar_lea.vmem (%p208_p11), %s753_s7, 256  ;;  %s637_s16 = smov (%p208_p11), [#allocation2]  }
  0x22   : > { %p551_p12 = scmp.ne.s32.totalorder (%p208_p11), %s753_s7, %s550_s6  ;;  %s554_s9 = sshll.u32 (%p208_p11), %s637_s16, 4  ;;  %s555_s9 = int_to_ptr.vmem [resolvable:$false] %s554_s9 }
  0x23   : > { %s556_s11 = scalar_lea.vmem (%p208_p11), %s555_s9, 512  ;;  %p557_p1 = scmp.lt.s32.totalorder (%p208_p11), %s753_s7, %s555_s9 }
  0x24   : > { %p552_p13 = pnand (%p208_p11), %p551_p12, %p698_p5  ;;  %p558_p2 = scmp.lt.s32.totalorder (%p208_p11), %s556_s11, %s550_s6 }
  0x26   : > { %p553_p0 = pneg (%p208_p11), %p552_p13  ;;  %p559_p3 = por (%p208_p11), %p558_p2, %p557_p1 }
  0x28   : > { %p560_p4 = pnand (%p208_p11), %p559_p3, %p553_p0 }
  0x8d   : >> { %v224_v7 = vpop.permute.xlu0 %223 }
  0x8e   : >> { %474 = vmatmul.mubr.msk.f32.vlgmr.msra.gmra.mrb[0].mxu0 %vm225_vm4, %v224_v7 }
 0x161   : >> { %v298_v8 = vpop.f32.mrb[0].mxu0 }
 0x162   : >> { %v299_v9 = vadd.f32 %v726_v0, %v298_v8  ;;  %v475_v10 = vpop.f32.mrb[1].mxu0 }
 0x164   : >> { %310 = vrot.lane.b32.xlu0 %v299_v9, %s635_s19  ;;  %v302_v12 = vadd.f32 %v299_v9, %v215_v11 }
 0x166   : >> { %v457_v13 = vmul.f32 -1.442695, %v302_v12 }
 0x168   : >> { %544 = vpow2.f32 %v457_v13 }
 0x172   : >> { %v545_v14 = vpop.eup %544 }
 0x173   : >> { %v306_v15 = vadd.f32 1.0, %v545_v14 }
 0x175   : >> { %546 = vrcp.f32 %v306_v15 }
 0x17f   : >> { %v547_v16 = vpop.eup %546 }
 0x180   : >> { %v320_v22 = vsub.f32 1.0, %v547_v16  ;;  %v326_v24 = vmul.f32 %v624_v3, %v547_v16 }
 0x1d6   : >> { %v311_v17 = vpop.permute.xlu0 %310 }
 0x1d7   : >> { %v313_v18 = vmul.f32 %v547_v16, %v311_v17 }
 0x1d9   : >> { %315 = vrot.lane.b32.xlu1 %v313_v18, %s636_s27 }
 0x24b   : >> { %v316_v19 = vpop.permute.xlu1 %315 }
 0x24c   : >> { %v318_v20 = vadd.f32 %v316_v19, %v215_v11 }
 0x24e   : >> { %548 = vtanh.f32 %v318_v20 }
 0x258   : >> { %v549_v21 = vpop.eup %548 }
 0x259   : >> { %322 = vrot.lane.b32.xlu1 %v549_v21, %s631_s17 }
 0x2cb   : >> { %v323_v23 = vpop.permute.xlu1 %322 }
 0x2cc   : >> { %v325_v25 = vmul.f32 %v323_v23, %v320_v22 }
 0x2ce   : >> { %v327_v3 = vadd.f32 %v326_v24, %v325_v25  }
 0x2d0   : >> { %329 = vrot.lane.b32.xlu0 %v327_v3, %s631_s17 }
 0x33d   : > { %210 = sbr.rel (!%p208_p11) target bundleno = 26 (0x1a), region = 82 }
 0x342   : >> { %v330_v26 = vpop.permute.xlu0 %329 }
 0x343   : >> { %334 = vst.msk [vmem:[%s332_s28] sm:$0x3] %vm333_vm5, %v330_v26 }
 0x344   : > { %563 = shalt.err (!%p560_p4)
}
 0x345   : > { %s564_s24 = scalar_lea.hbm %s749_s5, 256  ;;  %s568_s17 = scalar_lea.hbm %s801_s3, 512 }
 0x346   : > { %p565_p7 = scmp.ne.s32.totalorder %s749_s5, %s564_s24  ;;  %p569_p10 = scmp.lt.u32.totalorder %s749_s5, %s801_s3 }
 0x347   : > { %p570_p11 = scmp.lt.u32.totalorder %s568_s17, %s564_s24  ;;  %p572_p13 = scmp.lt.u32.totalorder %s564_s24, %s749_s5 }
 0x348   : > { %p566_p8 = pnand %p565_p7, %p698_p5 }
 0x349   : > { %p571_p12 = por %p570_p11, %p569_p10 }
 0x34a   : > { %p567_p9 = pneg %p566_p8 }
 0x34b   : > { %p573_p0 = por %p572_p13, %p571_p12 }
 0x34d   : > { %p574_p1 = pnand %p573_p0, %p567_p9 }
 0x34f   : > { %577 = shalt.err (!%p574_p1)
}
 0x350   : > { %s638_s26 = smov 32   ;;  %s639_s27 = smov 2  }
 0x351   : > { %480 = dma.vmem_to_hbm [thread:$0]  (%p698_p5), %s753_s7, 256, %s749_s5, %s757_s8, %s638_s26, %s638_s26, %s639_s27  }
 0x352 PF: > { %p486_p2 = scmp.ge.s32.totalorder %s620_s15, 2  ;;  %s364_s28 = sand.u32 1, %s608_s12  }
 0x353   : > { %s365_s29 = scalar_lea.sflag [#allocation3], %s364_s28 }
 0x354   : > { %p483_p3 = pnand %p486_p2, %p702_p6 }
 0x356   : > { %603 = dma.done.wait (!%p483_p3), %s365_s29, 256  }
 0x357   : > { %605 = vsyncadd (!%p483_p3), %s365_s29, 4294967040  ;;  %p13_p4 = scmp.ge.s32.totalorder %s685_s18, 4   ;;  %s804_s12 = smov %s612_s13 }
 0x358   : > { %s805_s13 = smov %s616_s14  ;;  %s806_s14 = smov %s696_s21 }
 0x359   : > { %s807_s15 = smov %s685_s18  ;;  %15 = sbr.rel (!%p13_p4) target bundleno = 3 (0x3), region = 93 }
 0x360   :  { %370 = vsyncpa [#allocation3], 1 }
 0x361   :  { %372 = vsyncpa [#allocation3 + $0x1], 1 }

</bundles_post_ra>
